<compile_context>
chip_gen: v7x
topology: tpu7x:2x2x1
jax: 0.10.0
libtpu: 0.0.40
codegen_flags: <defaults>
</compile_context>

<pallas_src>
import functools

import jax
import jax.numpy as jnp
import numpy as np
from jax import lax
from jax.experimental import pallas as pl
from jax.experimental.pallas import tpu as pltpu


def _rpn_head_kernel(x_ref, wconv_ref, bconv_ref, wh_ref, bh_ref, out_ref,
                     acc_ref, *, Wp):
    """One batch element per grid step.

    x_ref:     (1, C, S)    zero-padded NCHW input, spatial flattened to
                            S = round_up((H+2)*(W+2), 128)
    wconv_ref: (9, C, C)    3x3 conv weight, (tap, Cout, Cin), tap = ky*3+kx
    bconv_ref: (C, 1)
    wh_ref:    (5A, C)      fused [cls_logits; bbox_pred] 1x1 weights
    bh_ref:    (5A, 1)
    out_ref:   (1, 5A, S)   fused head output in padded-spatial coordinates
    acc_ref:   (C, S) f32   VMEM scratch accumulator for the 3x3 conv
    """
    x = x_ref[0]                       # (C, S), native dtype (no f32 up-cast)
    S = x.shape[-1]

    acc_ref[...] = jnp.zeros_like(acc_ref)
    # 3x3 conv as 9 lane-rolled MXU matmuls accumulated into the f32 scratch.
    # Rolls wrap only into zero-pad / discarded positions, so no masking is
    # needed for the valid (interior) outputs.
    for ky in range(3):
        for kx in range(3):
            tap = ky * 3 + kx
            d = (ky - 1) * Wp + (kx - 1)           # flat spatial offset
            xs = x if d == 0 else pltpu.roll(x, (-d) % S, 1)
            acc_ref[...] += jnp.dot(wconv_ref[tap], xs,
                                    preferred_element_type=jnp.float32)

    # Bias + ReLU in f32 (explicit promotion of the bias).
    t = jnp.maximum(acc_ref[...] + bconv_ref[...].astype(jnp.float32), 0.0)

    # Fused 1x1 heads: one (5A, C) @ (C, S) matmul, lane-dense output slab.
    out = jnp.dot(wh_ref[...], t.astype(wh_ref.dtype),
                  preferred_element_type=jnp.float32)
    out = out + bh_ref[...].astype(jnp.float32)
    out_ref[0] = out.astype(out_ref.dtype)


def _rpn_head_single_level(x_nchw, params):
    """Run the Pallas kernel on a single NCHW feature map."""
    wconv9, bconv, w_heads, b_heads = params
    N, C, H, W = x_nchw.shape
    A5 = w_heads.shape[0]              # 5 * num_anchors (A logits + 4A boxes)
    A = A5 // 5
    Hp, Wp = H + 2, W + 2
    S = Hp * Wp
    S_pad = ((S + 127) // 128) * 128   # lane-dense / rotation-friendly

    # Zero-pad H and W by 1 (conv padding=1), flatten spatial, pad lane tail.
    xp = jnp.pad(x_nchw, ((0, 0), (0, 0), (1, 1), (1, 1)))
    xp = xp.reshape(N, C, S)
    xp = jnp.pad(xp, ((0, 0), (0, 0), (0, S_pad - S)))
    # TODO(synk): move the zero-padding into the kernel and add halo row
    # tiling (grid=(N, H//TH)) for production-scale FPN maps so one level's
    # tile never exceeds v7x's 64 MiB VMEM and the pipeline has depth.

    kernel = functools.partial(_rpn_head_kernel, Wp=Wp)

    fused = pl.pallas_call(
        kernel,
        out_shape=jax.ShapeDtypeStruct((N, A5, S_pad), x_nchw.dtype),
        grid_spec=pltpu.PrefetchScalarGridSpec(
            num_scalar_prefetch=0,
            grid=(N,),
            in_specs=[
                pl.BlockSpec((1, C, S_pad), lambda n: (n, 0, 0)),
                pl.BlockSpec((9, C, C), lambda n: (0, 0, 0)),
                pl.BlockSpec((C, 1), lambda n: (0, 0)),
                pl.BlockSpec((A5, C), lambda n: (0, 0)),
                pl.BlockSpec((A5, 1), lambda n: (0, 0)),
            ],
            out_specs=pl.BlockSpec((1, A5, S_pad), lambda n: (n, 0, 0)),
            scratch_shapes=[pltpu.VMEM((C, S_pad), jnp.float32)],
        ),
        compiler_params=pltpu.CompilerParams(
            dimension_semantics=("parallel",),
            vmem_limit_bytes=32 * 1024 * 1024),
    )(xp, wconv9, bconv, w_heads, b_heads)

    # Drop lane tail + spatial padding, split the fused slab -> NCHW outputs.
    fused = fused[:, :, :S].reshape(N, A5, Hp, Wp)[:, :, 1:H + 1, 1:W + 1]
    return fused[:, :A], fused[:, A:]


def rpn_head_forward(features, params):
    """features: list of NCHW arrays -> (list of logits NCHW, list of bbox NCHW)."""
    logits, bbox_reg = [], []
    for feat in features:
        lg, bb = _rpn_head_single_level(feat, params)
        logits.append(lg)
        bbox_reg.append(bb)
    return logits, bbox_reg


def init_params(key, in_channels, num_anchors, dtype=jnp.float32):
    """Deterministic init matching nn.init.normal_(std=0.01), bias=0."""
    k1, k2, k3 = jax.random.split(key, 3)
    C, A = in_channels, num_anchors
    # PyTorch layouts: conv (Cout, Cin, kh, kw); 1x1 convs (Out, Cin, 1, 1).
    wconv_oihw = 0.01 * jax.random.normal(k1, (C, C, 3, 3), dtype)
    wcls_oi = 0.01 * jax.random.normal(k2, (A, C, 1, 1), dtype)
    wbox_oi = 0.01 * jax.random.normal(k3, (4 * A, C, 1, 1), dtype)
    # Kernel layouts.
    wconv9 = jnp.transpose(wconv_oihw, (2, 3, 0, 1)).reshape(9, C, C)  # (tap,Co,Ci)
    w_heads = jnp.concatenate([wcls_oi[:, :, 0, 0],
                               wbox_oi[:, :, 0, 0]], axis=0)           # (5A, C)
    bconv = jnp.zeros((C, 1), dtype)
    b_heads = jnp.zeros((5 * A, 1), dtype)
    return (wconv9, bconv, w_heads, b_heads), (wconv_oihw, wcls_oi, wbox_oi)


def _reference_forward(features, torch_layout_weights):
    """Pure-JAX NCHW reference using lax convs (mirrors the PyTorch forward)."""
    wconv_oihw, wcls_oi, wbox_oi = torch_layout_weights
    dn = ("NCHW", "OIHW", "NCHW")
    logits, bbox_reg = [], []
    for x in features:
        t = lax.conv_general_dilated(x, wconv_oihw, (1, 1),
                                     ((1, 1), (1, 1)), dimension_numbers=dn)
        t = jnp.maximum(t, 0.0)  # bias is 0
        lg = lax.conv_general_dilated(t, wcls_oi, (1, 1),
                                      ((0, 0), (0, 0)), dimension_numbers=dn)
        bb = lax.conv_general_dilated(t, wbox_oi, (1, 1),
                                      ((0, 0), (0, 0)), dimension_numbers=dn)
        logits.append(lg)
        bbox_reg.append(bb)
    return logits, bbox_reg


if __name__ == "__main__":
    in_channels = 4
    num_anchors = 3

    key = jax.random.PRNGKey(0)
    kp, kx1, kx2 = jax.random.split(key, 3)
    params, torch_w = init_params(kp, in_channels, num_anchors)

    # Two FPN-like feature levels (NCHW), as the module's forward expects a list.
    features = [
        jax.random.normal(kx1, (2, in_channels, 16, 16), jnp.float32),
        jax.random.normal(kx2, (2, in_channels, 8, 8), jnp.float32),
    ]

    logits, bbox_reg = rpn_head_forward(features, params)
    jax.block_until_ready(logits)
    jax.block_until_ready(bbox_reg)

    # Correctness check against a pure-JAX NCHW reference.
    ref_logits, ref_bbox = _reference_forward(features, torch_w)
    for got, ref in zip(logits + bbox_reg, ref_logits + ref_bbox):
        np.testing.assert_allclose(np.asarray(got), np.asarray(ref),
                                   rtol=1e-4, atol=1e-4)

    print("KERNEL_OK")
</pallas_src>

<mosaic_0001>
module attributes {stable_mosaic.version = 11 : i64} {
  func.func @_rpn_head_kernel(%arg0: i32, %arg1: memref<1x4x384xf32, #tpu.memory_space<vmem>>, %arg2: memref<9x4x4xf32, #tpu.memory_space<vmem>>, %arg3: memref<4x1xf32, #tpu.memory_space<vmem>>, %arg4: memref<15x4xf32, #tpu.memory_space<vmem>>, %arg5: memref<15x1xf32, #tpu.memory_space<vmem>>, %arg6: memref<1x15x384xf32, #tpu.memory_space<vmem>>, %arg7: memref<4x384xf32, #tpu.memory_space<vmem>>) attributes {dimension_semantics = [#tpu.dimension_semantics<parallel>], iteration_bounds = array<i64: 2>, scalar_prefetch = 0 : i64, scratch_operands = 1 : i64, tpu.core_type = #tpu.core_type<tc>, window_params = [{transform_indices = @transform_0, window_bounds = array<i64: 1, 4, 384>}, {pipeline_mode = #tpu.pipeline_mode<synchronous>, transform_indices = @transform_1, window_bounds = array<i64: 9, 4, 4>}, {pipeline_mode = #tpu.pipeline_mode<synchronous>, transform_indices = @transform_2, window_bounds = array<i64: 4, 1>}, {pipeline_mode = #tpu.pipeline_mode<synchronous>, transform_indices = @transform_3, window_bounds = array<i64: 15, 4>}, {pipeline_mode = #tpu.pipeline_mode<synchronous>, transform_indices = @transform_4, window_bounds = array<i64: 15, 1>}, {transform_indices = @transform_5, window_bounds = array<i64: 1, 15, 384>}]} {
    %c0 = arith.constant 0 : index
    %c0_0 = arith.constant 0 : index
    %c0_1 = arith.constant 0 : index
    %0 = vector.load %arg1[%c0, %c0_0, %c0_1] : memref<1x4x384xf32, #tpu.memory_space<vmem>>, vector<1x4x384xf32>
    %1 = vector.shape_cast %0 : vector<1x4x384xf32> to vector<4x384xf32>
    %cst = arith.constant 0.000000e+00 : f32
    %2 = vector.broadcast %cst : f32 to vector<4x384xf32>
    %c0_2 = arith.constant 0 : index
    %c0_3 = arith.constant 0 : index
    %3 = vector.load %arg7[%c0_2, %c0_3] : memref<4x384xf32, #tpu.memory_space<vmem>>, vector<4x384xf32>
    tpu.vector_store %arg7[%c0_2, %c0_3], %2 {strides = array<i32>} : memref<4x384xf32, #tpu.memory_space<vmem>>, vector<4x384xf32>,
    %c19_i32 = arith.constant 19 : i32
    %4 = tpu.dynamic_rotate %1 by %c19_i32 dim 1 : vector<4x384xf32>, i32 -> vector<4x384xf32>
    %c0_4 = arith.constant 0 : index
    %c0_5 = arith.constant 0 : index
    %5 = vector.load %arg7[%c0_4, %c0_5] : memref<4x384xf32, #tpu.memory_space<vmem>>, vector<4x384xf32>
    %c0_6 = arith.constant 0 : index
    %c0_7 = arith.constant 0 : index
    %c0_8 = arith.constant 0 : index
    %6 = vector.load %arg2[%c0_6, %c0_7, %c0_8] : memref<9x4x4xf32, #tpu.memory_space<vmem>>, vector<1x4x4xf32>
    %7 = vector.shape_cast %6 : vector<1x4x4xf32> to vector<4x4xf32>
    %cst_9 = arith.constant dense<0.000000e+00> : vector<4x384xf32>
    %8 = tpu.matmul %7, %4, %cst_9 {dimension_numbers = #tpu.dot_dimension_numbers<[1], [0], [0], [1], [0, 0, 1, 1], [], []>} : vector<4x4xf32>, vector<4x384xf32>, vector<4x384xf32> -> vector<4x384xf32>
    %9 = arith.addf %5, %8 : vector<4x384xf32>
    %c0_10 = arith.constant 0 : index
    %c0_11 = arith.constant 0 : index
    %10 = vector.load %arg7[%c0_10, %c0_11] : memref<4x384xf32, #tpu.memory_space<vmem>>, vector<4x384xf32>
    tpu.vector_store %arg7[%c0_10, %c0_11], %9 {strides = array<i32>} : memref<4x384xf32, #tpu.memory_space<vmem>>, vector<4x384xf32>,
    %c18_i32 = arith.constant 18 : i32
    %11 = tpu.dynamic_rotate %1 by %c18_i32 dim 1 : vector<4x384xf32>, i32 -> vector<4x384xf32>
    %c0_12 = arith.constant 0 : index
    %c0_13 = arith.constant 0 : index
    %12 = vector.load %arg7[%c0_12, %c0_13] : memref<4x384xf32, #tpu.memory_space<vmem>>, vector<4x384xf32>
    %c1 = arith.constant 1 : index
    %c0_14 = arith.constant 0 : index
    %c0_15 = arith.constant 0 : index
    %13 = vector.load %arg2[%c1, %c0_14, %c0_15] : memref<9x4x4xf32, #tpu.memory_space<vmem>>, vector<1x4x4xf32>
    %14 = vector.shape_cast %13 : vector<1x4x4xf32> to vector<4x4xf32>
    %cst_16 = arith.constant dense<0.000000e+00> : vector<4x384xf32>
    %15 = tpu.matmul %14, %11, %cst_16 {dimension_numbers = #tpu.dot_dimension_numbers<[1], [0], [0], [1], [0, 0, 1, 1], [], []>} : vector<4x4xf32>, vector<4x384xf32>, vector<4x384xf32> -> vector<4x384xf32>
    %16 = arith.addf %12, %15 : vector<4x384xf32>
    %c0_17 = arith.constant 0 : index
    %c0_18 = arith.constant 0 : index
    %17 = vector.load %arg7[%c0_17, %c0_18] : memref<4x384xf32, #tpu.memory_space<vmem>>, vector<4x384xf32>
    tpu.vector_store %arg7[%c0_17, %c0_18], %16 {strides = array<i32>} : memref<4x384xf32, #tpu.memory_space<vmem>>, vector<4x384xf32>,
    %c17_i32 = arith.constant 17 : i32
    %18 = tpu.dynamic_rotate %1 by %c17_i32 dim 1 : vector<4x384xf32>, i32 -> vector<4x384xf32>
    %c0_19 = arith.constant 0 : index
    %c0_20 = arith.constant 0 : index
    %19 = vector.load %arg7[%c0_19, %c0_20] : memref<4x384xf32, #tpu.memory_space<vmem>>, vector<4x384xf32>
    %c2 = arith.constant 2 : index
    %c0_21 = arith.constant 0 : index
    %c0_22 = arith.constant 0 : index
    %20 = vector.load %arg2[%c2, %c0_21, %c0_22] : memref<9x4x4xf32, #tpu.memory_space<vmem>>, vector<1x4x4xf32>
    %21 = vector.shape_cast %20 : vector<1x4x4xf32> to vector<4x4xf32>
    %cst_23 = arith.constant dense<0.000000e+00> : vector<4x384xf32>
    %22 = tpu.matmul %21, %18, %cst_23 {dimension_numbers = #tpu.dot_dimension_numbers<[1], [0], [0], [1], [0, 0, 1, 1], [], []>} : vector<4x4xf32>, vector<4x384xf32>, vector<4x384xf32> -> vector<4x384xf32>
    %23 = arith.addf %19, %22 : vector<4x384xf32>
    %c0_24 = arith.constant 0 : index
    %c0_25 = arith.constant 0 : index
    %24 = vector.load %arg7[%c0_24, %c0_25] : memref<4x384xf32, #tpu.memory_space<vmem>>, vector<4x384xf32>
    tpu.vector_store %arg7[%c0_24, %c0_25], %23 {strides = array<i32>} : memref<4x384xf32, #tpu.memory_space<vmem>>, vector<4x384xf32>,
    %c1_i32 = arith.constant 1 : i32
    %25 = tpu.dynamic_rotate %1 by %c1_i32 dim 1 : vector<4x384xf32>, i32 -> vector<4x384xf32>
    %c0_26 = arith.constant 0 : index
    %c0_27 = arith.constant 0 : index
    %26 = vector.load %arg7[%c0_26, %c0_27] : memref<4x384xf32, #tpu.memory_space<vmem>>, vector<4x384xf32>
    %c3 = arith.constant 3 : index
    %c0_28 = arith.constant 0 : index
    %c0_29 = arith.constant 0 : index
    %27 = vector.load %arg2[%c3, %c0_28, %c0_29] : memref<9x4x4xf32, #tpu.memory_space<vmem>>, vector<1x4x4xf32>
    %28 = vector.shape_cast %27 : vector<1x4x4xf32> to vector<4x4xf32>
    %cst_30 = arith.constant dense<0.000000e+00> : vector<4x384xf32>
    %29 = tpu.matmul %28, %25, %cst_30 {dimension_numbers = #tpu.dot_dimension_numbers<[1], [0], [0], [1], [0, 0, 1, 1], [], []>} : vector<4x4xf32>, vector<4x384xf32>, vector<4x384xf32> -> vector<4x384xf32>
    %30 = arith.addf %26, %29 : vector<4x384xf32>
    %c0_31 = arith.constant 0 : index
    %c0_32 = arith.constant 0 : index
    %31 = vector.load %arg7[%c0_31, %c0_32] : memref<4x384xf32, #tpu.memory_space<vmem>>, vector<4x384xf32>
    tpu.vector_store %arg7[%c0_31, %c0_32], %30 {strides = array<i32>} : memref<4x384xf32, #tpu.memory_space<vmem>>, vector<4x384xf32>,
    %c0_33 = arith.constant 0 : index
    %c0_34 = arith.constant 0 : index
    %32 = vector.load %arg7[%c0_33, %c0_34] : memref<4x384xf32, #tpu.memory_space<vmem>>, vector<4x384xf32>
    %c4 = arith.constant 4 : index
    %c0_35 = arith.constant 0 : index
    %c0_36 = arith.constant 0 : index
    %33 = vector.load %arg2[%c4, %c0_35, %c0_36] : memref<9x4x4xf32, #tpu.memory_space<vmem>>, vector<1x4x4xf32>
    %34 = vector.shape_cast %33 : vector<1x4x4xf32> to vector<4x4xf32>
    %cst_37 = arith.constant dense<0.000000e+00> : vector<4x384xf32>
    %35 = tpu.matmul %34, %1, %cst_37 {dimension_numbers = #tpu.dot_dimension_numbers<[1], [0], [0], [1], [0, 0, 1, 1], [], []>} : vector<4x4xf32>, vector<4x384xf32>, vector<4x384xf32> -> vector<4x384xf32>
    %36 = arith.addf %32, %35 : vector<4x384xf32>
    %c0_38 = arith.constant 0 : index
    %c0_39 = arith.constant 0 : index
    %37 = vector.load %arg7[%c0_38, %c0_39] : memref<4x384xf32, #tpu.memory_space<vmem>>, vector<4x384xf32>
    tpu.vector_store %arg7[%c0_38, %c0_39], %36 {strides = array<i32>} : memref<4x384xf32, #tpu.memory_space<vmem>>, vector<4x384xf32>,
    %c383_i32 = arith.constant 383 : i32
    %38 = tpu.dynamic_rotate %1 by %c383_i32 dim 1 : vector<4x384xf32>, i32 -> vector<4x384xf32>
    %c0_40 = arith.constant 0 : index
    %c0_41 = arith.constant 0 : index
    %39 = vector.load %arg7[%c0_40, %c0_41] : memref<4x384xf32, #tpu.memory_space<vmem>>, vector<4x384xf32>
    %c5 = arith.constant 5 : index
    %c0_42 = arith.constant 0 : index
    %c0_43 = arith.constant 0 : index
    %40 = vector.load %arg2[%c5, %c0_42, %c0_43] : memref<9x4x4xf32, #tpu.memory_space<vmem>>, vector<1x4x4xf32>
    %41 = vector.shape_cast %40 : vector<1x4x4xf32> to vector<4x4xf32>
    %cst_44 = arith.constant dense<0.000000e+00> : vector<4x384xf32>
    %42 = tpu.matmul %41, %38, %cst_44 {dimension_numbers = #tpu.dot_dimension_numbers<[1], [0], [0], [1], [0, 0, 1, 1], [], []>} : vector<4x4xf32>, vector<4x384xf32>, vector<4x384xf32> -> vector<4x384xf32>
    %43 = arith.addf %39, %42 : vector<4x384xf32>
    %c0_45 = arith.constant 0 : index
    %c0_46 = arith.constant 0 : index
    %44 = vector.load %arg7[%c0_45, %c0_46] : memref<4x384xf32, #tpu.memory_space<vmem>>, vector<4x384xf32>
    tpu.vector_store %arg7[%c0_45, %c0_46], %43 {strides = array<i32>} : memref<4x384xf32, #tpu.memory_space<vmem>>, vector<4x384xf32>,
    %c367_i32 = arith.constant 367 : i32
    %45 = tpu.dynamic_rotate %1 by %c367_i32 dim 1 : vector<4x384xf32>, i32 -> vector<4x384xf32>
    %c0_47 = arith.constant 0 : index
    %c0_48 = arith.constant 0 : index
    %46 = vector.load %arg7[%c0_47, %c0_48] : memref<4x384xf32, #tpu.memory_space<vmem>>, vector<4x384xf32>
    %c6 = arith.constant 6 : index
    %c0_49 = arith.constant 0 : index
    %c0_50 = arith.constant 0 : index
    %47 = vector.load %arg2[%c6, %c0_49, %c0_50] : memref<9x4x4xf32, #tpu.memory_space<vmem>>, vector<1x4x4xf32>
    %48 = vector.shape_cast %47 : vector<1x4x4xf32> to vector<4x4xf32>
    %cst_51 = arith.constant dense<0.000000e+00> : vector<4x384xf32>
    %49 = tpu.matmul %48, %45, %cst_51 {dimension_numbers = #tpu.dot_dimension_numbers<[1], [0], [0], [1], [0, 0, 1, 1], [], []>} : vector<4x4xf32>, vector<4x384xf32>, vector<4x384xf32> -> vector<4x384xf32>
    %50 = arith.addf %46, %49 : vector<4x384xf32>
    %c0_52 = arith.constant 0 : index
    %c0_53 = arith.constant 0 : index
    %51 = vector.load %arg7[%c0_52, %c0_53] : memref<4x384xf32, #tpu.memory_space<vmem>>, vector<4x384xf32>
    tpu.vector_store %arg7[%c0_52, %c0_53], %50 {strides = array<i32>} : memref<4x384xf32, #tpu.memory_space<vmem>>, vector<4x384xf32>,
    %c366_i32 = arith.constant 366 : i32
    %52 = tpu.dynamic_rotate %1 by %c366_i32 dim 1 : vector<4x384xf32>, i32 -> vector<4x384xf32>
    %c0_54 = arith.constant 0 : index
    %c0_55 = arith.constant 0 : index
    %53 = vector.load %arg7[%c0_54, %c0_55] : memref<4x384xf32, #tpu.memory_space<vmem>>, vector<4x384xf32>
    %c7 = arith.constant 7 : index
    %c0_56 = arith.constant 0 : index
    %c0_57 = arith.constant 0 : index
    %54 = vector.load %arg2[%c7, %c0_56, %c0_57] : memref<9x4x4xf32, #tpu.memory_space<vmem>>, vector<1x4x4xf32>
    %55 = vector.shape_cast %54 : vector<1x4x4xf32> to vector<4x4xf32>
    %cst_58 = arith.constant dense<0.000000e+00> : vector<4x384xf32>
    %56 = tpu.matmul %55, %52, %cst_58 {dimension_numbers = #tpu.dot_dimension_numbers<[1], [0], [0], [1], [0, 0, 1, 1], [], []>} : vector<4x4xf32>, vector<4x384xf32>, vector<4x384xf32> -> vector<4x384xf32>
    %57 = arith.addf %53, %56 : vector<4x384xf32>
    %c0_59 = arith.constant 0 : index
    %c0_60 = arith.constant 0 : index
    %58 = vector.load %arg7[%c0_59, %c0_60] : memref<4x384xf32, #tpu.memory_space<vmem>>, vector<4x384xf32>
    tpu.vector_store %arg7[%c0_59, %c0_60], %57 {strides = array<i32>} : memref<4x384xf32, #tpu.memory_space<vmem>>, vector<4x384xf32>,
    %c365_i32 = arith.constant 365 : i32
    %59 = tpu.dynamic_rotate %1 by %c365_i32 dim 1 : vector<4x384xf32>, i32 -> vector<4x384xf32>
    %c0_61 = arith.constant 0 : index
    %c0_62 = arith.constant 0 : index
    %60 = vector.load %arg7[%c0_61, %c0_62] : memref<4x384xf32, #tpu.memory_space<vmem>>, vector<4x384xf32>
    %c8 = arith.constant 8 : index
    %c0_63 = arith.constant 0 : index
    %c0_64 = arith.constant 0 : index
    %61 = vector.load %arg2[%c8, %c0_63, %c0_64] : memref<9x4x4xf32, #tpu.memory_space<vmem>>, vector<1x4x4xf32>
    %62 = vector.shape_cast %61 : vector<1x4x4xf32> to vector<4x4xf32>
    %cst_65 = arith.constant dense<0.000000e+00> : vector<4x384xf32>
    %63 = tpu.matmul %62, %59, %cst_65 {dimension_numbers = #tpu.dot_dimension_numbers<[1], [0], [0], [1], [0, 0, 1, 1], [], []>} : vector<4x4xf32>, vector<4x384xf32>, vector<4x384xf32> -> vector<4x384xf32>
    %64 = arith.addf %60, %63 : vector<4x384xf32>
    %c0_66 = arith.constant 0 : index
    %c0_67 = arith.constant 0 : index
    %65 = vector.load %arg7[%c0_66, %c0_67] : memref<4x384xf32, #tpu.memory_space<vmem>>, vector<4x384xf32>
    tpu.vector_store %arg7[%c0_66, %c0_67], %64 {strides = array<i32>} : memref<4x384xf32, #tpu.memory_space<vmem>>, vector<4x384xf32>,
    %c0_68 = arith.constant 0 : index
    %c0_69 = arith.constant 0 : index
    %66 = vector.load %arg7[%c0_68, %c0_69] : memref<4x384xf32, #tpu.memory_space<vmem>>, vector<4x384xf32>
    %c0_70 = arith.constant 0 : index
    %c0_71 = arith.constant 0 : index
    %67 = vector.load %arg3[%c0_70, %c0_71] : memref<4x1xf32, #tpu.memory_space<vmem>>, vector<4x1xf32>
    %68 = vector.broadcast %67 : vector<4x1xf32> to vector<4x384xf32>
    %69 = arith.addf %66, %68 : vector<4x384xf32>
    %cst_72 = arith.constant 0.000000e+00 : f32
    %70 = vector.broadcast %cst_72 : f32 to vector<4x384xf32>
    %71 = arith.maximumf %69, %70 : vector<4x384xf32>
    %c0_73 = arith.constant 0 : index
    %c0_74 = arith.constant 0 : index
    %72 = vector.load %arg4[%c0_73, %c0_74] : memref<15x4xf32, #tpu.memory_space<vmem>>, vector<15x4xf32>
    %cst_75 = arith.constant dense<0.000000e+00> : vector<15x384xf32>
    %73 = tpu.matmul %72, %71, %cst_75 {dimension_numbers = #tpu.dot_dimension_numbers<[1], [0], [0], [1], [0, 0, 1, 1], [], []>} : vector<15x4xf32>, vector<4x384xf32>, vector<15x384xf32> -> vector<15x384xf32>
    %c0_76 = arith.constant 0 : index
    %c0_77 = arith.constant 0 : index
    %74 = vector.load %arg5[%c0_76, %c0_77] : memref<15x1xf32, #tpu.memory_space<vmem>>, vector<15x1xf32>
    %75 = vector.broadcast %74 : vector<15x1xf32> to vector<15x384xf32>
    %76 = arith.addf %73, %75 : vector<15x384xf32>
    %c0_78 = arith.constant 0 : index
    %c0_79 = arith.constant 0 : index
    %c0_80 = arith.constant 0 : index
    %77 = vector.load %arg6[%c0_78, %c0_79, %c0_80] : memref<1x15x384xf32, #tpu.memory_space<vmem>>, vector<1x15x384xf32>
    %78 = vector.shape_cast %77 : vector<1x15x384xf32> to vector<15x384xf32>
    %79 = vector.shape_cast %76 : vector<15x384xf32> to vector<1x15x384xf32>
    tpu.vector_store %arg6[%c0_78, %c0_79, %c0_80], %79 {strides = array<i32>} : memref<1x15x384xf32, #tpu.memory_space<vmem>>, vector<1x15x384xf32>,
    return
  }
  func.func @transform_0(%arg0: i32) -> (i32, i32, i32) {
    %c0_i32 = arith.constant 0 : i32
    %c0_i32_0 = arith.constant 0 : i32
    %c0_i32_1 = arith.constant 0 : i32
    return %arg0, %c0_i32, %c0_i32_0 : i32, i32, i32
  }
  func.func @transform_1(%arg0: i32) -> (i32, i32, i32) {
    %c0_i32 = arith.constant 0 : i32
    %c0_i32_0 = arith.constant 0 : i32
    %c0_i32_1 = arith.constant 0 : i32
    %c0_i32_2 = arith.constant 0 : i32
    return %c0_i32, %c0_i32_0, %c0_i32_1 : i32, i32, i32
  }
  func.func @transform_2(%arg0: i32) -> (i32, i32) {
    %c0_i32 = arith.constant 0 : i32
    %c0_i32_0 = arith.constant 0 : i32
    %c0_i32_1 = arith.constant 0 : i32
    return %c0_i32, %c0_i32_0 : i32, i32
  }
  func.func @transform_3(%arg0: i32) -> (i32, i32) {
    %c0_i32 = arith.constant 0 : i32
    %c0_i32_0 = arith.constant 0 : i32
    %c0_i32_1 = arith.constant 0 : i32
    return %c0_i32, %c0_i32_0 : i32, i32
  }
  func.func @transform_4(%arg0: i32) -> (i32, i32) {
    %c0_i32 = arith.constant 0 : i32
    %c0_i32_0 = arith.constant 0 : i32
    %c0_i32_1 = arith.constant 0 : i32
    return %c0_i32, %c0_i32_0 : i32, i32
  }
  func.func @transform_5(%arg0: i32) -> (i32, i32, i32) {
    %c0_i32 = arith.constant 0 : i32
    %c0_i32_0 = arith.constant 0 : i32
    %c0_i32_1 = arith.constant 0 : i32
    return %arg0, %c0_i32, %c0_i32_0 : i32, i32, i32
  }
}

</mosaic_0001>

<bundles_post_ra>
// kernel: tpu_custom_call.1
= control target key start
LH: loop header
LB: loop body
LE: loop exit
PB: predicated region body
PF: predicated region fallthrough
CT: control target
= control target key end

     0   :  { %s2274_s18 = smov 0   ;;  %s2486_s0 = inlined_call_operand.vmem [shape: f32[2,4,384], index: 0, kind: input, shape index: {}]   ;;  %s2487_s1 = inlined_call_operand.vmem [shape: f32[9,4,4], index: 1, kind: input, shape index: {}]   ;;  %s2488_s2 = inlined_call_operand.vmem [shape: f32[4,1], index: 2, kind: input, shape index: {}]   ;;  %s2489_s3 = inlined_call_operand.vmem [shape: f32[15,4], index: 3, kind: input, shape index: {}]   ;;  %s2490_s4 = inlined_call_operand.vmem [shape: f32[15,1], index: 4, kind: input, shape index: {}]   ;;  %s2491_s5 = inlined_call_operand.vmem [shape: f32[2,15,384], index: 5, kind: output, shape index: {}]  }
   0x1 LB: > { %s2059_s19 = sadd.s32 4294967295, %s2230_s18   ;;  %p2063_p0 = scmp.ge.s32.totalorder %s2230_s18, 1  ;;  %s2230_s18 = sphi %s2274_s18, %s15_s18  }
   0x2   : > { %p187_p1 = scmp.lt.s32.totalorder %s2230_s18, 3 }
   0x4   : > { %p188_p2 = pnand %p2063_p0, %p187_p1 }
   0x5   : > { %p215_p3 = scmp.lt.s32.totalorder (!%p188_p2), %s2059_s19, 1  ;;  %v2232_v0 = vmov (!%p188_p2), 0.0   ;;  %vm2233_vm0 = vmmov (!%p188_p2), 0   ;;  %s2234_s24 = smov (!%p188_p2), 19   ;;  %v2240_v4 = vmov (!%p188_p2), 0   ;;  %v239_v6 = vlaneseq (!%p188_p2) }
   0x6   : > { %191 = sbr.rel (%p188_p2) target bundleno = 663 (0x297), region = 40  ;;  %2149 = vmatprep.subr.mxu1 (!%p188_p2), %v2232_v0  ;;  %228 = vst [vmem:[#allocation2 + $0x8] sm:$0xf] (!%p188_p2), %v2232_v0  ;;  %326 = vmatprep.mubr.f32.mxu0 (!%p188_p2), %v2232_v0  ;;  %s2235_s25 = smov (!%p188_p2), 18   ;;  %v1800_v5 = vld [vmem:[%s2488_s2] sm:$0xf] (!%p188_p2) }
   0x7   : > { %2151 = vmatprep.mubr.msk.f32.mxu1 (!%p188_p2), %vm2233_vm0, %v2232_v0  ;;  %s2236_s26 = smov (!%p188_p2), 17   ;;  %s2237_s27 = smov (!%p188_p2), 1   ;;  %2221 = vset.pattern.permute.xlu0 (!%p188_p2), %v2240_v4  ;;  %v2329_v7 = vand.u32 (!%p188_p2), 127, %v239_v6  ;;  %vm252_vm2 = vcmask (!%p188_p2), 1043456   ;;  %v247_v12 = vld [vmem:[%s2487_s1] sm:$0xf] (!%p188_p2) }
   0x8   : > { %s2238_s28 = smov (!%p188_p2), 127   ;;  %s2239_s29 = smov (!%p188_p2), 111   ;;  %2222 = vset.pattern.permute.xlu1 (!%p188_p2), %v2240_v4  ;;  %vm248_vm3 = vcmask (!%p188_p2), 31744   ;;  %v2071_v18 = vld [vmem:[%s2487_s1 + $0x4] sm:$0xf] (!%p188_p2) }
   0x9   : > { %s2241_s30 = smov (!%p188_p2), 110   ;;  %s2242_s6 = smov (!%p188_p2), 109   ;;  %vm241_vm1 = vcmp.lt.s32.totalorder (!%p188_p2), %v2329_v7, 19  ;;  %vm417_vm4 = vcmp.lt.s32.totalorder (!%p188_p2), %v2329_v7, 18  ;;  %vm592_vm5 = vcmp.lt.s32.totalorder (!%p188_p2), %v2329_v7, 17  ;;  %vm767_vm6 = vcmp.lt.s32.totalorder (!%p188_p2), %v2329_v7, 1 }
   0xa   : > { %v2077_v27 = vld [vmem:[%s2487_s1 + $0x8] sm:$0xf] (!%p188_p2)  ;;  %v2083_v32 = vld [vmem:[%s2487_s1 + $0xc] sm:$0xf] (!%p188_p2)  ;;  %vm1104_vm7 = vcmp.lt.s32.totalorder (!%p188_p2), %v2329_v7, 127  ;;  %vm1279_vm8 = vcmp.lt.s32.totalorder (!%p188_p2), %v2329_v7, 111 }
   0xb   : > { %v2089_v38 = vld [vmem:[%s2487_s1 + $0x10] sm:$0xf] (!%p188_p2)  ;;  %v2095_v44 = vld [vmem:[%s2487_s1 + $0x14] sm:$0xf] (!%p188_p2)  ;;  %v2101_v50 = vld [vmem:[%s2487_s1 + $0x18] sm:$0xf] (!%p188_p2) }
   0xc   : > { %vm1454_vm9 = vcmp.lt.s32.totalorder (!%p188_p2), %v2329_v7, 110  ;;  %v2107_v56 = vld [vmem:[%s2487_s1 + $0x1c] sm:$0xf] (!%p188_p2)  ;;  %vm1629_vm10 = vcmp.lt.s32.totalorder (!%p188_p2), %v2329_v7, 109  ;;  %v1820_v4 = vld [vmem:[%s2490_s4 + $0x8] sm:$0x7f] (!%p188_p2) }
   0xd   : > { %s2493_s19 = smov (!%p215_p3, %s2059_s19), 1 }
   0xe   : > { %s2199_s20 = smul.u32 12, %s2493_s19 }
   0xf   : > { %s2200_s12 = smul.u32 48, %s2493_s19 }
  0x10   : > { %s219_s23 = scalar_lea.vmem %s2486_s0, %s2199_s20 }
  0x11   : > { %v2293_v1 = vld [vmem:[%s219_s23 + $0x8] sm:$0xf]  ;;  %v2295_v2 = vld [vmem:[%s219_s23] sm:$0xff]  ;;  %s224_s15 = scalar_lea.vmem %s2491_s5, %s2200_s12 }
  0x12   : > { %237 = vrot.lane.b32.xlu1 %v2293_v1, %s2234_s24  ;;  %233 = vrot.lane.b32.xlu0 %v2295_v2, %s2234_s24  ;;  %v2301_v3 = vcombine.high %v2295_v2, %v2295_v2 }
  0x16   : > { %235 = vrot.lane.b32.xlu0 %v2301_v3, %s2234_s24  ;;  %411 = vrot.lane.b32.xlu1 %v2295_v2, %s2235_s25 }
  0x1a   : > { %413 = vrot.lane.b32.xlu0 %v2301_v3, %s2235_s25  ;;  %415 = vrot.lane.b32.xlu1 %v2293_v1, %s2235_s25 }
  0x1e   : > { %586 = vrot.lane.b32.xlu0 %v2295_v2, %s2236_s26  ;;  %588 = vrot.lane.b32.xlu1 %v2301_v3, %s2236_s26 }
  0x22   : > { %590 = vrot.lane.b32.xlu0 %v2293_v1, %s2236_s26  ;;  %761 = vrot.lane.b32.xlu1 %v2295_v2, %s2237_s27 }
  0x26   : > { %763 = vrot.lane.b32.xlu0 %v2301_v3, %s2237_s27  ;;  %765 = vrot.lane.b32.xlu1 %v2293_v1, %s2237_s27 }
  0x2a   : > { %1100 = vrot.lane.b32.xlu0 %v2301_v3, %s2238_s28  ;;  %1102 = vrot.lane.b32.xlu1 %v2293_v1, %s2238_s28 }
  0x2e   : > { %1098 = vrot.lane.b32.xlu0 %v2295_v2, %s2238_s28  ;;  %1275 = vrot.lane.b32.xlu1 %v2301_v3, %s2239_s29 }
  0x32   : > { %1277 = vrot.lane.b32.xlu0 %v2293_v1, %s2239_s29  ;;  %1273 = vrot.lane.b32.xlu1 %v2295_v2, %s2239_s29 }
  0x36   : > { %1450 = vrot.lane.b32.xlu0 %v2301_v3, %s2241_s30  ;;  %1452 = vrot.lane.b32.xlu1 %v2293_v1, %s2241_s30 }
  0x3a   : > { %1448 = vrot.lane.b32.xlu0 %v2295_v2, %s2241_s30  ;;  %1625 = vrot.lane.b32.xlu1 %v2301_v3, %s2242_s6 }
  0x3e   : > { %1627 = vrot.lane.b32.xlu0 %v2293_v1, %s2242_s6  ;;  %1623 = vrot.lane.b32.xlu1 %v2295_v2, %s2242_s6 }
  0x42   : > { %1803 = vperm.xlu0 %2221, %v1800_v5   ;;  %v246_v5 = vld [vmem:[#allocation2 + $0x8] sm:$0xf] }
  0x84   : > { %v238_v8 = vpop.permute.xlu1 %237  ;;  %v234_v9 = vpop.permute.xlu0 %233 }
  0x85   : > { %v244_v15 = vsel %vm241_vm1, %v238_v8, %v234_v9 }
  0x88   : > { %v236_v10 = vpop.permute.xlu0 %235  ;;  %v412_v11 = vpop.permute.xlu1 %411 }
  0x89   : > { %v243_v13 = vsel %vm241_vm1, %v234_v9, %v236_v10  ;;  %v242_v14 = vsel %vm241_vm1, %v236_v10, %v238_v8 }
  0x8a   : > { %2066 = vmatprep.subr.msk.mxu0 %vm252_vm2, %v243_v13  ;;  %2150 = vmatpush3.msk.msra.mxu1 %vm252_vm2, %v242_v14 }
  0x8b   : > { %2067 = vmatpush1.msk.msra.mxu0 %vm252_vm2, %v244_v15  ;;  %2152 = vmatmul.mubr.msk.f32.vlgmr.msra.gmra.mrb[0].mxu1 %vm248_vm3, %v247_v12 }
  0x8c   : > { %2068 = vmatmul.mubr.msk.f32.vlgmr.msra.gmra.mrb[0].mxu0 %vm248_vm3, %v247_v12  ;;  %v414_v16 = vpop.permute.xlu0 %413  ;;  %v416_v17 = vpop.permute.xlu1 %415  ;;  %2154 = vmatprep.subr.mxu1 %v2232_v0 }
  0x8d   : > { %v419_v19 = vsel %vm417_vm4, %v412_v11, %v414_v16  ;;  %v418_v20 = vsel %vm417_vm4, %v414_v16, %v416_v17  ;;  %v420_v21 = vsel %vm417_vm4, %v416_v17, %v412_v11  ;;  %501 = vmatprep.mubr.f32.mxu0 %v2232_v0  ;;  %2156 = vmatprep.mubr.msk.f32.mxu1 %vm2233_vm0, %v2232_v0 }
  0x8e   : > { %2072 = vmatprep.subr.msk.mxu0 %vm252_vm2, %v419_v19  ;;  %2155 = vmatpush3.msk.msra.mxu1 %vm252_vm2, %v418_v20 }
  0x8f   : > { %2073 = vmatpush1.msk.msra.mxu0 %vm252_vm2, %v420_v21  ;;  %2157 = vmatmul.mubr.msk.f32.vlgmr.msra.gmra.mrb[2].mxu1 %vm248_vm3, %v2071_v18 }
  0x90   : > { %2074 = vmatmul.mubr.msk.f32.vlgmr.msra.gmra.mrb[2].mxu0 %vm248_vm3, %v2071_v18  ;;  %v587_v22 = vpop.permute.xlu0 %586  ;;  %v589_v23 = vpop.permute.xlu1 %588  ;;  %2159 = vmatprep.subr.mxu1 %v2232_v0 }
  0x91   : > { %v594_v24 = vsel %vm592_vm5, %v587_v22, %v589_v23  ;;  %676 = vmatprep.mubr.f32.mxu0 %v2232_v0  ;;  %2161 = vmatprep.mubr.msk.f32.mxu1 %vm2233_vm0, %v2232_v0 }
  0x92   : > { %2078 = vmatprep.subr.msk.mxu0 %vm252_vm2, %v594_v24 }
  0x94   : > { %v591_v25 = vpop.permute.xlu0 %590  ;;  %v762_v26 = vpop.permute.xlu1 %761 }
  0x95   : > { %v593_v28 = vsel %vm592_vm5, %v589_v23, %v591_v25  ;;  %v595_v29 = vsel %vm592_vm5, %v591_v25, %v587_v22 }
  0x96   : > { %2079 = vmatpush1.msk.msra.mxu0 %vm252_vm2, %v595_v29  ;;  %2160 = vmatpush3.msk.msra.mxu1 %vm252_vm2, %v593_v28 }
  0x97   : > { %2080 = vmatmul.mubr.msk.f32.vlgmr.msra.gmra.mrb[4].mxu0 %vm248_vm3, %v2077_v27  ;;  %2162 = vmatmul.mubr.msk.f32.vlgmr.msra.gmra.mrb[4].mxu1 %vm248_vm3, %v2077_v27 }
  0x98   : > { %v764_v30 = vpop.permute.xlu0 %763  ;;  %v766_v31 = vpop.permute.xlu1 %765  ;;  %2164 = vmatprep.subr.mxu1 %v2232_v0  ;;  %851 = vmatprep.mubr.f32.mxu0 %v2232_v0 }
  0x99   : > { %v769_v33 = vsel %vm767_vm6, %v762_v26, %v764_v30  ;;  %v768_v34 = vsel %vm767_vm6, %v764_v30, %v766_v31  ;;  %v770_v35 = vsel %vm767_vm6, %v766_v31, %v762_v26  ;;  %2166 = vmatprep.mubr.msk.f32.mxu1 %vm2233_vm0, %v2232_v0 }
  0x9a   : > { %2084 = vmatprep.subr.msk.mxu0 %vm252_vm2, %v769_v33  ;;  %2165 = vmatpush3.msk.msra.mxu1 %vm252_vm2, %v768_v34 }
  0x9b   : > { %2085 = vmatpush1.msk.msra.mxu0 %vm252_vm2, %v770_v35  ;;  %2167 = vmatmul.mubr.msk.f32.vlgmr.msra.gmra.mrb[6].mxu1 %vm248_vm3, %v2083_v32 }
  0x9c   : > { %2086 = vmatmul.mubr.msk.f32.vlgmr.msra.gmra.mrb[6].mxu0 %vm248_vm3, %v2083_v32  ;;  %2090 = vmatprep.subr.msk.mxu0 %vm252_vm2, %v2301_v3  ;;  %v1101_v36 = vpop.permute.xlu0 %1100  ;;  %v1103_v37 = vpop.permute.xlu1 %1102  ;;  %v1819_v3 = vld [vmem:[%s2490_s4] sm:$0xff] }
  0x9d   : > { %2091 = vmatpush1.msk.msra.mxu0 %vm252_vm2, %v2295_v2  ;;  %1013 = vmatprep.mubr.f32.mxu0 %v2232_v0  ;;  %v1105_v39 = vsel %vm1104_vm7, %v1101_v36, %v1103_v37  ;;  %v2456_v2 = vld [vmem:[%s2489_s3] sm:$0xff] }
  0x9e   : > { %2169 = vmatprep.subr.mxu1 %v2232_v0  ;;  %2171 = vmatprep.mubr.msk.f32.mxu1 %vm2233_vm0, %v2232_v0 }
  0x9f   : > { %2170 = vmatpush3.msk.msra.mxu1 %vm252_vm2, %v2293_v1  ;;  %2096 = vmatprep.subr.msk.mxu0 %vm252_vm2, %v1105_v39  ;;  %v2113_v1 = vld [vmem:[%s2487_s1 + $0x20] sm:$0xf] }
  0xa0   : > { %2092 = vmatmul.mubr.msk.f32.vlgmr.msra.gmra.mrb[8].mxu0 %vm248_vm3, %v2089_v38  ;;  %2172 = vmatmul.mubr.msk.f32.vlgmr.msra.gmra.mrb[8].mxu1 %vm248_vm3, %v2089_v38  ;;  %v1099_v40 = vpop.permute.xlu0 %1098  ;;  %v1276_v41 = vpop.permute.xlu1 %1275 }
  0xa1   : > { %v1106_v42 = vsel %vm1104_vm7, %v1099_v40, %v1101_v36  ;;  %v1107_v43 = vsel %vm1104_vm7, %v1103_v37, %v1099_v40  ;;  %2174 = vmatprep.subr.mxu1 %v2232_v0  ;;  %1188 = vmatprep.mubr.f32.mxu0 %v2232_v0 }
  0xa2   : > { %2097 = vmatpush1.msk.msra.mxu0 %vm252_vm2, %v1106_v42  ;;  %2175 = vmatpush3.msk.msra.mxu1 %vm252_vm2, %v1107_v43 }
  0xa3   : > { %2176 = vmatprep.mubr.msk.f32.mxu1 %vm2233_vm0, %v2232_v0  ;;  %2179 = vmatprep.subr.mxu1 %v2232_v0 }
  0xa4   : > { %2098 = vmatmul.mubr.msk.f32.vlgmr.msra.gmra.mrb[10].mxu0 %vm248_vm3, %v2095_v44  ;;  %2177 = vmatmul.mubr.msk.f32.vlgmr.msra.gmra.mrb[10].mxu1 %vm248_vm3, %v2095_v44  ;;  %v1278_v45 = vpop.permute.xlu0 %1277  ;;  %v1274_v46 = vpop.permute.xlu1 %1273 }
  0xa5   : > { %v1280_v47 = vsel %vm1279_vm8, %v1276_v41, %v1278_v45  ;;  %v1281_v48 = vsel %vm1279_vm8, %v1274_v46, %v1276_v41  ;;  %v1282_v49 = vsel %vm1279_vm8, %v1278_v45, %v1274_v46  ;;  %1363 = vmatprep.mubr.f32.mxu0 %v2232_v0  ;;  %2181 = vmatprep.mubr.msk.f32.mxu1 %vm2233_vm0, %v2232_v0 }
  0xa6   : > { %2102 = vmatprep.subr.msk.mxu0 %vm252_vm2, %v1280_v47  ;;  %2180 = vmatpush3.msk.msra.mxu1 %vm252_vm2, %v1282_v49 }
  0xa7   : > { %2103 = vmatpush1.msk.msra.mxu0 %vm252_vm2, %v1281_v48  ;;  %2184 = vmatprep.subr.mxu1 %v2232_v0 }
  0xa8   : > { %2104 = vmatmul.mubr.msk.f32.vlgmr.msra.gmra.mrb[12].mxu0 %vm248_vm3, %v2101_v50  ;;  %v1451_v51 = vpop.permute.xlu0 %1450  ;;  %v1453_v52 = vpop.permute.xlu1 %1452  ;;  %2182 = vmatmul.mubr.msk.f32.vlgmr.msra.gmra.mrb[12].mxu1 %vm248_vm3, %v2101_v50 }
  0xa9   : > { %v1455_v53 = vsel %vm1454_vm9, %v1451_v51, %v1453_v52  ;;  %1538 = vmatprep.mubr.f32.mxu0 %v2232_v0  ;;  %2186 = vmatprep.mubr.msk.f32.mxu1 %vm2233_vm0, %v2232_v0 }
  0xaa   : > { %2108 = vmatprep.subr.msk.mxu0 %vm252_vm2, %v1455_v53  ;;  %1823 = vperm.xlu1 %2222, %v1819_v3  }
  0xac   : > { %v1449_v54 = vpop.permute.xlu0 %1448  ;;  %v1626_v55 = vpop.permute.xlu1 %1625 }
  0xad   : > { %v1456_v57 = vsel %vm1454_vm9, %v1449_v54, %v1451_v51  ;;  %v1457_v58 = vsel %vm1454_vm9, %v1453_v52, %v1449_v54  ;;  %v2243_v54 = vmov 839922192  }
  0xae   : > { %2109 = vmatpush1.msk.msra.mxu0 %vm252_vm2, %v1456_v57  ;;  %2185 = vmatpush3.msk.msra.mxu1 %vm252_vm2, %v1457_v58  ;;  %v1809_v58 = vshrl.u32 %v239_v6, 7 }
  0xaf   : > { %2110 = vmatmul.mubr.msk.f32.vlgmr.msra.gmra.mrb[14].mxu0 %vm248_vm3, %v2107_v56  ;;  %2187 = vmatmul.mubr.msk.f32.vlgmr.msra.gmra.mrb[14].mxu1 %vm248_vm3, %v2107_v56 }
  0xb0   : > { %v1628_v59 = vpop.permute.xlu0 %1627  ;;  %v1624_v60 = vpop.permute.xlu1 %1623  ;;  %2189 = vmatprep.subr.mxu1 %v2232_v0  ;;  %1713 = vmatprep.mubr.f32.mxu0 %v2232_v0 }
  0xb1   : > { %v1630_v61 = vsel %vm1629_vm10, %v1626_v55, %v1628_v59  ;;  %v1631_v62 = vsel %vm1629_vm10, %v1624_v60, %v1626_v55  ;;  %v1632_v63 = vsel %vm1629_vm10, %v1628_v59, %v1624_v60  ;;  %2191 = vmatprep.mubr.msk.f32.mxu1 %vm2233_vm0, %v2232_v0  ;;  %1828 = vperm.xlu1 %2222, %v1820_v4   ;;  %v1806_v55 = vunpack.c.l.s4 %v2243_v54 }
  0xb2   : > { %2114 = vmatprep.subr.msk.mxu0 %vm252_vm2, %v1630_v61  ;;  %2190 = vmatpush3.msk.msra.mxu1 %vm252_vm2, %v1632_v63 }
  0xb3   : > { %2115 = vmatpush1.msk.msra.mxu0 %vm252_vm2, %v1631_v62  ;;  %2192 = vmatmul.mubr.msk.f32.vlgmr.msra.gmra.mrb[16].mxu1 %vm248_vm3, %v2113_v1  ;;  %v1807_v57 = vunpack.c.0.s8 %v1806_v55 }
  0xb4   : > { %2116 = vmatmul.mubr.msk.f32.vlgmr.msra.gmra.mrb[16].mxu0 %vm248_vm3, %v2113_v1  ;;  %2196 = vmatprep.mubr.msk.f32.mxu1 %vm248_vm3, %v2456_v2 }
  0xb5   : > { %1910 = vmatprep.mubr.f32.mxu0 %v2232_v0  ;;  %v1810_v1 = vsub.s32 %v1807_v57, %v1809_v58 }
 0x15e   : > { %v399_v7 = vpop.f32.mrb[0].mxu1 }
 0x15f   : > { %v328_v8 = vpop.f32.mrb[0].mxu0  ;;  %v408_v9 = vadd.f32 %v399_v7, %v246_v5  ;;  %v2153_v10 = vpop.f32.mrb[1].mxu1 }
 0x160   : > { %v330_v11 = vpop.f32.mrb[1].mxu0  ;;  %v1804_v7 = vpop.permute.xlu0 %1803 }
 0x161   : > { %v405_v12 = vcombine.low %v328_v8, %v330_v11  ;;  %410 = vst [vmem:[#allocation2 + $0x8] sm:$0xf] %v408_v9 }
 0x162   : > { %v574_v13 = vpop.f32.mrb[2].mxu1 }
 0x163   : > { %v503_v14 = vpop.f32.mrb[2].mxu0  ;;  %v2158_v15 = vpop.f32.mrb[3].mxu1 }
 0x164   : > { %v505_v16 = vpop.f32.mrb[3].mxu0 }
 0x165   : > { %v580_v17 = vcombine.low %v503_v14, %v505_v16 }
 0x167   : > { %v582_v18 = vadd.f32 %v580_v17, %v405_v12 }
 0x168   : > { %v422_v19 = vld [vmem:[#allocation2 + $0x8] sm:$0xf] }
 0x169   : > { %v583_v20 = vadd.f32 %v574_v13, %v422_v19  ;;  %v1811_v13 = vrot.slane %v1804_v7, %v1810_v1  ;;  %v1818_v19 = vld [vmem:[%s2489_s3 + $0x8] sm:$0x7f] }
 0x16a   : > { %v678_v21 = vpop.f32.mrb[4].mxu0  ;;  %v749_v22 = vpop.f32.mrb[4].mxu1 }
 0x16b   : > { %585 = vst [vmem:[#allocation2 + $0x8] sm:$0xf] %v583_v20  ;;  %v680_v23 = vpop.f32.mrb[5].mxu0  ;;  %v2163_v24 = vpop.f32.mrb[5].mxu1 }
 0x16c   : > { %v755_v25 = vcombine.low %v678_v21, %v680_v23 }
 0x16e   : > { %v757_v26 = vadd.f32 %v755_v25, %v582_v18  ;;  %v924_v27 = vpop.f32.mrb[6].mxu1 }
 0x16f   : > { %v853_v28 = vpop.f32.mrb[6].mxu0  ;;  %v2168_v29 = vpop.f32.mrb[7].mxu1 }
 0x170   : > { %v855_v30 = vpop.f32.mrb[7].mxu0 }
 0x171   : > { %v930_v31 = vcombine.low %v853_v28, %v855_v30 }
 0x172   : > { %v597_v32 = vld [vmem:[#allocation2 + $0x8] sm:$0xf] }
 0x173   : > { %v758_v33 = vadd.f32 %v749_v22, %v597_v32  ;;  %v932_v34 = vadd.f32 %v930_v31, %v757_v26  ;;  %v1015_v35 = vpop.f32.mrb[8].mxu0  ;;  %v1086_v36 = vpop.f32.mrb[8].mxu1 }
 0x174   : > { %v1017_v37 = vpop.f32.mrb[9].mxu0  ;;  %v2173_v38 = vpop.f32.mrb[9].mxu1 }
 0x175   : > { %760 = vst [vmem:[#allocation2 + $0x8] sm:$0xf] %v758_v33  ;;  %v1092_v39 = vcombine.low %v1015_v35, %v1017_v37 }
 0x177   : > { %v1094_v40 = vadd.f32 %v1092_v39, %v932_v34  ;;  %v1190_v41 = vpop.f32.mrb[10].mxu0  ;;  %v1261_v42 = vpop.f32.mrb[10].mxu1 }
 0x178   : > { %v1192_v43 = vpop.f32.mrb[11].mxu0  ;;  %v2178_v44 = vpop.f32.mrb[11].mxu1 }
 0x179   : > { %v1267_v45 = vcombine.low %v1190_v41, %v1192_v43 }
 0x17b   : > { %v1269_v46 = vadd.f32 %v1267_v45, %v1094_v40  ;;  %v1365_v47 = vpop.f32.mrb[12].mxu0  ;;  %v1436_v48 = vpop.f32.mrb[12].mxu1 }
 0x17c   : > { %v772_v49 = vld [vmem:[#allocation2 + $0x8] sm:$0xf]  ;;  %v1367_v50 = vpop.f32.mrb[13].mxu0  ;;  %v2183_v51 = vpop.f32.mrb[13].mxu1 }
 0x17d   : > { %v933_v52 = vadd.f32 %v924_v27, %v772_v49  ;;  %v1442_v53 = vcombine.low %v1365_v47, %v1367_v50 }
 0x17f   : > { %935 = vst [vmem:[#allocation2 + $0x8] sm:$0xf] %v933_v52  ;;  %v1444_v56 = vadd.f32 %v1442_v53, %v1269_v46 }
 0x182   : > { %v1540_v59 = vpop.f32.mrb[14].mxu0  ;;  %v1611_v60 = vpop.f32.mrb[14].mxu1 }
 0x183   : > { %v1542_v61 = vpop.f32.mrb[15].mxu0  ;;  %v2188_v62 = vpop.f32.mrb[15].mxu1 }
 0x184   : > { %v1617_v63 = vcombine.low %v1540_v59, %v1542_v61 }
 0x186   : > { %v937_v3 = vld [vmem:[#allocation2 + $0x8] sm:$0xf]  ;;  %v1619_v4 = vadd.f32 %v1617_v63, %v1444_v56  ;;  %v1786_v5 = vpop.f32.mrb[16].mxu1 }
 0x187   : > { %v1095_v8 = vadd.f32 %v1086_v36, %v937_v3  ;;  %v1715_v9 = vpop.f32.mrb[16].mxu0  ;;  %v2193_v10 = vpop.f32.mrb[17].mxu1 }
 0x188   : > { %v1717_v11 = vpop.f32.mrb[17].mxu0 }
 0x189   : > { %1097 = vst [vmem:[#allocation2 + $0x8] sm:$0xf] %v1095_v8  ;;  %v1792_v12 = vcombine.low %v1715_v9, %v1717_v11 }
 0x18b   : > { %v1794_v14 = vadd.f32 %v1792_v12, %v1619_v4 }
 0x18d   : > { %v1813_v15 = vadd.f32 %v1811_v13, %v1794_v14 }
 0x18f   : > { %v1815_v6 = vmax.f32 %v1813_v15, 0.0 }
 0x190   : > { %v1109_v16 = vld [vmem:[#allocation2 + $0x8] sm:$0xf] }
 0x191   : > { %v1270_v17 = vadd.f32 %v1261_v42, %v1109_v16  ;;  %v1833_v18 = vcombine.high %v1815_v6, %v1815_v6 }
 0x193   : > { %1272 = vst [vmem:[#allocation2 + $0x8] sm:$0xf] %v1270_v17  ;;  %2119 = vmatprep.subr.msk.mxu0 %vm252_vm2, %v1833_v18 }
 0x194   : > { %2120 = vmatpush1.msk.msra.mxu0 %vm252_vm2, %v1815_v6 }
 0x195   : > { %2121 = vmatmul.mubr.msk.f32.vlgmr.msra.gmra.mrb[18].mxu0 %vm248_vm3, %v2456_v2 }
 0x196   : > { %1916 = vmatprep.mubr.f32.mxu0 %v2232_v0  ;;  %v1824_v0 = vpop.permute.xlu1 %1823 }
 0x199   : > { %2122 = vmatmul.mubr.msk.f32.gmra.mrb[20].mxu0 %vm248_vm3, %v1818_v19 }
 0x19a   : > { %v1284_v20 = vld [vmem:[#allocation2 + $0x8] sm:$0xf]  ;;  %v1829_v32 = vpop.permute.xlu1 %1828 }
 0x19b   : > { %v1445_v21 = vadd.f32 %v1436_v48, %v1284_v20 }
 0x19d   : > { %1447 = vst [vmem:[#allocation2 + $0x8] sm:$0xf] %v1445_v21 }
 0x1a4   : > { %v1459_v22 = vld [vmem:[#allocation2 + $0x8] sm:$0xf] }
 0x1a5   : > { %v1620_v23 = vadd.f32 %v1611_v60, %v1459_v22 }
 0x1a7   : > { %1622 = vst [vmem:[#allocation2 + $0x8] sm:$0xf] %v1620_v23 }
 0x1ae   : > { %v1634_v24 = vld [vmem:[#allocation2 + $0x8] sm:$0xf] }
 0x1af   : > { %v1795_v25 = vadd.f32 %v1786_v5, %v1634_v24 }
 0x1b1   : > { %1797 = vst [vmem:[#allocation2 + $0x8] sm:$0xf] %v1795_v25 }
 0x1b8   : > { %v1799_v26 = vld [vmem:[#allocation2 + $0x8] sm:$0xf] }
 0x1b9   : > { %v1814_v2 = vadd.f32 %v1811_v13, %v1799_v26 }
 0x1bb   : > { %v1816_v27 = vmax.f32 %v1814_v2, 0.0 }
 0x1bd   : > { %2194 = vmatprep.subr.msk.mxu1 %vm252_vm2, %v1816_v27 }
 0x1be   : > { %2195 = vmatpush3.msk.msra.mxu1 %vm252_vm2, %v1816_v27 }
 0x1bf   : > { %2197 = vmatmul.mubr.msk.f32.vlgmr.msra.gmra.mrb[18].mxu1 %vm248_vm3, %v1818_v19 }
 0x268   : > { %v1912_v28 = vpop.f32.mrb[18].mxu0 }
 0x269   : > { %v1913_v29 = vadd.f32 %v1912_v28, %v1824_v0  ;;  %v1914_v30 = vpop.f32.mrb[19].mxu0 }
 0x26a   : > { %v1915_v31 = vadd.f32 %v1914_v30, %v1824_v0 }
 0x26b   : > { %1998 = vst [vmem:[%s224_s15] sm:$0xff] %v1913_v29 }
 0x26c   : > { %1999 = vst [vmem:[%s224_s15 + $0x8] sm:$0xff] %v1915_v31  ;;  %v1918_v33 = vpop.f32.mrb[20].mxu0 }
 0x26d   : > { %v1919_v34 = vadd.f32 %v1918_v33, %v1829_v32  ;;  %v1920_v35 = vpop.f32.mrb[21].mxu0 }
 0x26e   : > { %v1921_v36 = vadd.f32 %v1920_v35, %v1829_v32 }
 0x26f   : > { %2001 = vst [vmem:[%s224_s15 + $0x18] sm:$0x7f] %v1919_v34 }
 0x270   : > { %2002 = vst [vmem:[%s224_s15 + $0x20] sm:$0x7f] %v1921_v36 }
 0x292   : > { %v2198_v37 = vpop.f32.mrb[18].mxu1 }
 0x293   : > { %v1995_v38 = vadd.f32 %v2198_v37, %v1829_v32  ;;  %v1989_v39 = vpop.f32.mrb[19].mxu1 }
 0x294   : > { %v1990_v40 = vadd.f32 %v1989_v39, %v1824_v0 }
 0x295   : > { %2003 = vst [vmem:[%s224_s15 + $0x28] sm:$0x7f] %v1995_v38 }
 0x296   : > { %2000 = vst [vmem:[%s224_s15 + $0x10] sm:$0xff] %v1990_v40 }
 0x297 PF: > { %s15_s18 = sadd.s32 1, %s2230_s18  }
 0x298   : > { %p12_p4 = scmp.ge.s32.totalorder %s15_s18, 4  }
 0x29a   :  { %14 = sbr.rel (!%p12_p4) target bundleno = 1 (0x1), region = 78 }

</bundles_post_ra>
